<compile_context>
chip_gen: v6e
topology: v6e:2x2x1
jax: 0.10.0
libtpu: 0.0.40
codegen_flags: <defaults>
</compile_context>

<pallas_src>
import jax
import jax.numpy as jnp
from jax.experimental import pallas as pl
from jax.experimental.pallas import tpu as pltpu


def _round_up(x, m):
    return ((x + m - 1) // m) * m


def _lora_kernel(x_ref, w_ref, bw_ref, a_ref, b_ref, o_ref, acc_ref, xa_ref):
    """One (tm, tn) output tile; K (reduction) is the innermost grid axis."""
    k = pl.program_id(2)
    nk = pl.num_programs(2)

    @pl.when(k == 0)
    def _init():
        # Fold the bias into the accumulator init.
        acc_ref[...] = jnp.broadcast_to(
            bw_ref[...].astype(jnp.float32), acc_ref.shape)
        xa_ref[...] = jnp.zeros_like(xa_ref)

    x = x_ref[...]                                                  # (tm, tk) bf16
    # Base projection partial sum (MXU, f32 accumulation).
    acc_ref[...] += jnp.dot(x, w_ref[...], preferred_element_type=jnp.float32)
    # LoRA A-projection partial sum (rank padded to 128 lanes -> nearly free).
    xa_ref[...] += jnp.dot(x, a_ref[...], preferred_element_type=jnp.float32)

    @pl.when(k == nk - 1)
    def _finalize():
        delta = jnp.dot(xa_ref[...].astype(b_ref.dtype), b_ref[...],
                        preferred_element_type=jnp.float32)         # (tm, tn)
        o_ref[...] = (acc_ref[...] + delta).astype(o_ref.dtype)


def lora_block(x, w_t, b_w, a_t, b_t, *,
               tile_m=256, tile_n=256, tile_k=512,
               compute_dtype=jnp.bfloat16):
    """Fused LoRA projection.

    x   : [B, S, dim]
    w_t : [dim, out]   (base weight, transposed vs nn.Linear)
    b_w : [out]        (base bias)
    a_t : [dim, r]     (LoRA down projection, transposed)
    b_t : [r, out]     (LoRA up projection, transposed)
    """
    B, S, dim = x.shape
    out_dim = w_t.shape[1]
    r = a_t.shape[1]
    M = B * S

    # --- tile / pad geometry (lane-dense: last dims multiples of 128) ---
    tile_m = _round_up(tile_m, 8)
    tile_n = _round_up(tile_n, 128)
    tile_k = _round_up(tile_k, 128)

    tm = min(tile_m, _round_up(M, 8))
    tn = min(tile_n, _round_up(out_dim, 128))
    tk = min(tile_k, _round_up(dim, 128))
    m_pad = _round_up(M, tm)
    n_pad = _round_up(out_dim, tn)
    k_pad = _round_up(dim, tk)
    r_pad = _round_up(r, 128)

    # --- zero-pad (keeps the math exact) and cast to the compute dtype ---
    x2d = x.reshape(M, dim)
    x_p = jnp.pad(x2d, ((0, m_pad - M), (0, k_pad - dim))).astype(compute_dtype)
    w_p = jnp.pad(w_t, ((0, k_pad - dim), (0, n_pad - out_dim))).astype(compute_dtype)
    a_p = jnp.pad(a_t, ((0, k_pad - dim), (0, r_pad - r))).astype(compute_dtype)
    b_p = jnp.pad(b_t, ((0, r_pad - r), (0, n_pad - out_dim))).astype(compute_dtype)
    bw_p = jnp.pad(b_w, (0, n_pad - out_dim)).astype(jnp.float32).reshape(1, n_pad)

    grid = (m_pad // tm, n_pad // tn, k_pad // tk)

    out_itemsize = jnp.dtype(x.dtype).itemsize
    cost = pl.CostEstimate(
        flops=2 * M * (out_dim * dim + r * dim + r * out_dim),
        transcendentals=0,
        bytes_accessed=(x_p.size + w_p.size + a_p.size + b_p.size) * 2
        + bw_p.size * 4 + m_pad * n_pad * out_itemsize,
    )

    # NOTE: W/A/B/bias tiles are grid-invariant along one or more axes; if VMEM
    # gets tight on v7x, single-buffer them via pipeline_mode=pl.Buffered(1).
    y_p = pl.pallas_call(
        _lora_kernel,
        out_shape=jax.ShapeDtypeStruct((m_pad, n_pad), x.dtype),
        grid_spec=pltpu.PrefetchScalarGridSpec(
            num_scalar_prefetch=0,
            grid=grid,
            in_specs=[
                pl.BlockSpec((tm, tk), lambda i, j, k: (i, k)),      # x tile
                pl.BlockSpec((tk, tn), lambda i, j, k: (k, j)),      # W tile
                pl.BlockSpec((1, tn), lambda i, j, k: (0, j)),       # bias tile
                pl.BlockSpec((tk, r_pad), lambda i, j, k: (k, 0)),   # A tile
                pl.BlockSpec((r_pad, tn), lambda i, j, k: (0, j)),   # B tile
            ],
            out_specs=pl.BlockSpec((tm, tn), lambda i, j, k: (i, j)),
            scratch_shapes=[
                pltpu.VMEM((tm, tn), jnp.float32),     # base + bias accumulator
                pltpu.VMEM((tm, r_pad), jnp.float32),  # x @ A accumulator
            ],
        ),
        compiler_params=pltpu.CompilerParams(
            dimension_semantics=("parallel", "parallel", "arbitrary")),
        cost_estimate=cost,
    )(x_p, w_p, bw_p, a_p, b_p)

    return y_p[:M, :out_dim].reshape(B, S, out_dim)


def lora_block_ref(x, w_t, b_w, a_t, b_t):
    base = jnp.einsum("bnd,do->bno", x, w_t) + b_w
    delta = jnp.einsum("bnr,ro->bno",
                       jnp.einsum("bnd,dr->bnr", x, a_t), b_t)
    return base + delta


if __name__ == "__main__":
    # Small shapes consistent with a LoRA'd projection.
    batch, seq, dim, out_dim, rank = 2, 8, 32, 32, 4

    key = jax.random.PRNGKey(0)
    kx, kw, kbw, ka, kb = jax.random.split(key, 5)

    x = jax.random.normal(kx, (batch, seq, dim), dtype=jnp.float32)

    # nn.Linear-style params, stored transposed as (in, out) for the kernel:
    #   w:        Linear(dim, out_dim)            (bias)
    #   linear_a: Linear(dim, rank, bias=False)
    #   linear_b: Linear(rank, out_dim, bias=False)
    w_t = jax.random.normal(kw, (dim, out_dim), dtype=jnp.float32) / jnp.sqrt(dim * 1.0)
    b_w = jax.random.normal(kbw, (out_dim,), dtype=jnp.float32) * 0.01
    a_t = jax.random.normal(ka, (dim, rank), dtype=jnp.float32) / jnp.sqrt(dim * 1.0)
    b_t = jax.random.normal(kb, (rank, out_dim), dtype=jnp.float32) / jnp.sqrt(rank * 1.0)

    y = jax.block_until_ready(lora_block(x, w_t, b_w, a_t, b_t))
    y_ref = lora_block_ref(x, w_t, b_w, a_t, b_t)

    assert y.shape == (batch, seq, out_dim)
    # Kernel computes in bf16 with f32 accumulation; reference is all-f32.
    assert jnp.allclose(y, y_ref, atol=5e-2, rtol=5e-2), "mismatch vs reference"

    print("KERNEL_OK")
</pallas_src>

<mosaic_0001>
module attributes {stable_mosaic.version = 11 : i64} {
  func.func @_lora_kernel(%arg0: i32, %arg1: i32, %arg2: i32, %arg3: memref<16x128xbf16, #tpu.memory_space<vmem>>, %arg4: memref<128x128xbf16, #tpu.memory_space<vmem>>, %arg5: memref<1x128xf32, #tpu.memory_space<vmem>>, %arg6: memref<128x128xbf16, #tpu.memory_space<vmem>>, %arg7: memref<128x128xbf16, #tpu.memory_space<vmem>>, %arg8: memref<16x128xf32, #tpu.memory_space<vmem>>, %arg9: memref<16x128xf32, #tpu.memory_space<vmem>>, %arg10: memref<16x128xf32, #tpu.memory_space<vmem>>) attributes {dimension_semantics = [#tpu.dimension_semantics<parallel>, #tpu.dimension_semantics<parallel>, #tpu.dimension_semantics<arbitrary>], iteration_bounds = array<i64: 1, 1, 1>, scalar_prefetch = 0 : i64, scratch_operands = 2 : i64, tpu.core_type = #tpu.core_type<tc>, window_params = [{transform_indices = @transform_0, window_bounds = array<i64: 16, 128>}, {transform_indices = @transform_1, window_bounds = array<i64: 128, 128>}, {transform_indices = @transform_2, window_bounds = array<i64: 1, 128>}, {transform_indices = @transform_3, window_bounds = array<i64: 128, 128>}, {transform_indices = @transform_4, window_bounds = array<i64: 128, 128>}, {transform_indices = @transform_5, window_bounds = array<i64: 16, 128>}]} {
    %c0_i32 = arith.constant 0 : i32
    %0 = arith.cmpi eq, %arg2, %c0_i32 : i32
    %1 = arith.extui %0 : i1 to i32
    %c0_i32_0 = arith.constant 0 : i32
    %2 = arith.cmpi ne, %1, %c0_i32_0 : i32
    scf.if %2 {
      %c0_17 = arith.constant 0 : index
      %c0_18 = arith.constant 0 : index
      %17 = vector.load %arg5[%c0_17, %c0_18] : memref<1x128xf32, #tpu.memory_space<vmem>>, vector<1x128xf32>
      %18 = vector.shape_cast %17 : vector<1x128xf32> to vector<1x128xf32>
      %19 = vector.broadcast %18 : vector<1x128xf32> to vector<16x128xf32>
      %c0_19 = arith.constant 0 : index
      %c0_20 = arith.constant 0 : index
      %20 = vector.load %arg9[%c0_19, %c0_20] : memref<16x128xf32, #tpu.memory_space<vmem>>, vector<16x128xf32>
      tpu.vector_store %arg9[%c0_19, %c0_20], %19 {strides = array<i32>} : memref<16x128xf32, #tpu.memory_space<vmem>>, vector<16x128xf32>,
      %cst_21 = arith.constant 0.000000e+00 : f32
      %21 = vector.broadcast %cst_21 : f32 to vector<16x128xf32>
      %c0_22 = arith.constant 0 : index
      %c0_23 = arith.constant 0 : index
      %22 = vector.load %arg10[%c0_22, %c0_23] : memref<16x128xf32, #tpu.memory_space<vmem>>, vector<16x128xf32>
      tpu.vector_store %arg10[%c0_22, %c0_23], %21 {strides = array<i32>} : memref<16x128xf32, #tpu.memory_space<vmem>>, vector<16x128xf32>,
    } else {
    }
    %c0 = arith.constant 0 : index
    %c0_1 = arith.constant 0 : index
    %3 = vector.load %arg3[%c0, %c0_1] : memref<16x128xbf16, #tpu.memory_space<vmem>>, vector<16x128xbf16>
    %c0_2 = arith.constant 0 : index
    %c0_3 = arith.constant 0 : index
    %4 = vector.load %arg9[%c0_2, %c0_3] : memref<16x128xf32, #tpu.memory_space<vmem>>, vector<16x128xf32>
    %c0_4 = arith.constant 0 : index
    %c0_5 = arith.constant 0 : index
    %5 = vector.load %arg4[%c0_4, %c0_5] : memref<128x128xbf16, #tpu.memory_space<vmem>>, vector<128x128xbf16>
    %cst = arith.constant dense<0.000000e+00> : vector<16x128xf32>
    %6 = tpu.matmul %3, %5, %cst {dimension_numbers = #tpu.dot_dimension_numbers<[1], [0], [0], [1], [0, 0, 1, 1], [], []>} : vector<16x128xbf16>, vector<128x128xbf16>, vector<16x128xf32> -> vector<16x128xf32>
    %7 = arith.addf %4, %6 : vector<16x128xf32>
    %c0_6 = arith.constant 0 : index
    %c0_7 = arith.constant 0 : index
    %8 = vector.load %arg9[%c0_6, %c0_7] : memref<16x128xf32, #tpu.memory_space<vmem>>, vector<16x128xf32>
    tpu.vector_store %arg9[%c0_6, %c0_7], %7 {strides = array<i32>} : memref<16x128xf32, #tpu.memory_space<vmem>>, vector<16x128xf32>,
    %c0_8 = arith.constant 0 : index
    %c0_9 = arith.constant 0 : index
    %9 = vector.load %arg10[%c0_8, %c0_9] : memref<16x128xf32, #tpu.memory_space<vmem>>, vector<16x128xf32>
    %c0_10 = arith.constant 0 : index
    %c0_11 = arith.constant 0 : index
    %10 = vector.load %arg6[%c0_10, %c0_11] : memref<128x128xbf16, #tpu.memory_space<vmem>>, vector<128x128xbf16>
    %cst_12 = arith.constant dense<0.000000e+00> : vector<16x128xf32>
    %11 = tpu.matmul %3, %10, %cst_12 {dimension_numbers = #tpu.dot_dimension_numbers<[1], [0], [0], [1], [0, 0, 1, 1], [], []>} : vector<16x128xbf16>, vector<128x128xbf16>, vector<16x128xf32> -> vector<16x128xf32>
    %12 = arith.addf %9, %11 : vector<16x128xf32>
    %c0_13 = arith.constant 0 : index
    %c0_14 = arith.constant 0 : index
    %13 = vector.load %arg10[%c0_13, %c0_14] : memref<16x128xf32, #tpu.memory_space<vmem>>, vector<16x128xf32>
    tpu.vector_store %arg10[%c0_13, %c0_14], %12 {strides = array<i32>} : memref<16x128xf32, #tpu.memory_space<vmem>>, vector<16x128xf32>,
    %c0_i32_15 = arith.constant 0 : i32
    %14 = arith.cmpi eq, %arg2, %c0_i32_15 : i32
    %15 = arith.extui %14 : i1 to i32
    %c0_i32_16 = arith.constant 0 : i32
    %16 = arith.cmpi ne, %15, %c0_i32_16 : i32
    scf.if %16 {
      %c0_17 = arith.constant 0 : index
      %c0_18 = arith.constant 0 : index
      %17 = vector.load %arg10[%c0_17, %c0_18] : memref<16x128xf32, #tpu.memory_space<vmem>>, vector<16x128xf32>
      %18 = arith.truncf %17 : vector<16x128xf32> to vector<16x128xbf16>
      %c0_19 = arith.constant 0 : index
      %c0_20 = arith.constant 0 : index
      %19 = vector.load %arg7[%c0_19, %c0_20] : memref<128x128xbf16, #tpu.memory_space<vmem>>, vector<128x128xbf16>
      %cst_21 = arith.constant dense<0.000000e+00> : vector<16x128xf32>
      %20 = tpu.matmul %18, %19, %cst_21 {dimension_numbers = #tpu.dot_dimension_numbers<[1], [0], [0], [1], [0, 0, 1, 1], [], []>} : vector<16x128xbf16>, vector<128x128xbf16>, vector<16x128xf32> -> vector<16x128xf32>
      %c0_22 = arith.constant 0 : index
      %c0_23 = arith.constant 0 : index
      %21 = vector.load %arg9[%c0_22, %c0_23] : memref<16x128xf32, #tpu.memory_space<vmem>>, vector<16x128xf32>
      %22 = arith.addf %21, %20 : vector<16x128xf32>
      %c0_24 = arith.constant 0 : index
      %c0_25 = arith.constant 0 : index
      %23 = vector.load %arg8[%c0_24, %c0_25] : memref<16x128xf32, #tpu.memory_space<vmem>>, vector<16x128xf32>
      tpu.vector_store %arg8[%c0_24, %c0_25], %22 {strides = array<i32>} : memref<16x128xf32, #tpu.memory_space<vmem>>, vector<16x128xf32>,
    } else {
    }
    return
  }
  func.func @transform_0(%arg0: i32, %arg1: i32, %arg2: i32) -> (i32, i32) {
    %c0_i32 = arith.constant 0 : i32
    return %arg0, %arg2 : i32, i32
  }
  func.func @transform_1(%arg0: i32, %arg1: i32, %arg2: i32) -> (i32, i32) {
    %c0_i32 = arith.constant 0 : i32
    return %arg2, %arg1 : i32, i32
  }
  func.func @transform_2(%arg0: i32, %arg1: i32, %arg2: i32) -> (i32, i32) {
    %c0_i32 = arith.constant 0 : i32
    %c0_i32_0 = arith.constant 0 : i32
    return %c0_i32, %arg1 : i32, i32
  }
  func.func @transform_3(%arg0: i32, %arg1: i32, %arg2: i32) -> (i32, i32) {
    %c0_i32 = arith.constant 0 : i32
    %c0_i32_0 = arith.constant 0 : i32
    return %arg2, %c0_i32 : i32, i32
  }
  func.func @transform_4(%arg0: i32, %arg1: i32, %arg2: i32) -> (i32, i32) {
    %c0_i32 = arith.constant 0 : i32
    %c0_i32_0 = arith.constant 0 : i32
    return %c0_i32, %arg1 : i32, i32
  }
  func.func @transform_5(%arg0: i32, %arg1: i32, %arg2: i32) -> (i32, i32) {
    %c0_i32 = arith.constant 0 : i32
    return %arg0, %arg1 : i32, i32
  }
}

</mosaic_0001>

<bundles_post_ra>
// kernel: tpu_custom_call.1
= control target key start
LH: loop header
LB: loop body
LE: loop exit
PB: predicated region body
PF: predicated region fallthrough
CT: control target
= control target key end

     0   :  { %10 = vsyncpa [#allocation5], 0  ;;  %s816_s0 = inlined_call_operand.hbm [shape: bf16[16,128], index: 0, kind: input, shape index: {}]   ;;  %s817_s1 = inlined_call_operand.hbm [shape: bf16[128,128], index: 1, kind: input, shape index: {}]   ;;  %s818_s2 = inlined_call_operand.vmem [shape: f32[1,128], index: 2, kind: input, shape index: {}]   ;;  %s819_s3 = inlined_call_operand.hbm [shape: bf16[128,128], index: 3, kind: input, shape index: {}]   ;;  %s820_s4 = inlined_call_operand.hbm [shape: bf16[128,128], index: 4, kind: input, shape index: {}]   ;;  %s821_s5 = inlined_call_operand.hbm [shape: f32[16,128], index: 5, kind: output, shape index: {}]  }
   0x1   :  { %11 = vsyncpa [#allocation8], 0 }
   0x2   :  { %12 = vsyncpa [#allocation11], 0 }
   0x3   :  { %13 = vsyncpa [#allocation6], 0  ;;  %s715_s18 = smov [#allocation7]   ;;  %s716_s20 = smov [#allocation4]  }
   0x4   :  { %s31_s19 = sshll.u32 %s715_s18, 4  ;;  %s19_s21 = sshll.u32 %s716_s20, 4  ;;  %s32_s19 = int_to_ptr.vmem [resolvable:$true] %s31_s19  ;;  %s20_s21 = int_to_ptr.vmem [resolvable:$true] %s19_s21 }
   0x5   :  { %s615_s22 = scalar_lea.vmem %s32_s19, 1024  ;;  %p620_p1 = scmp.lt.s32.totalorder %s32_s19, %s32_s19 }
   0x6   :  { %p616_p0 = scmp.ne.s32.totalorder %s32_s19, %s615_s22  ;;  %p621_p2 = scmp.lt.s32.totalorder %s615_s22, %s615_s22 }
   0x8   :  { %p622_p3 = por %p621_p2, %p620_p1 }
   0xa   :  { %p623_p4 = pnand %p622_p3, %p616_p0 }
   0xc   :  { %626 = shalt.err (!%p623_p4)
}
   0xd   :  { %s717_s23 = smov 64   ;;  %s718_s24 = smov 4  }
   0xe   :  { %37 = dma.hbm_to_vmem [thread:$0]  %s817_s1, 1024, %s32_s19, [#allocation8], %s717_s23, %s717_s23, %s718_s24  }
   0xf   :  { %s635_s27 = scalar_lea.vmem %s20_s21, 128  ;;  %p640_p6 = scmp.lt.s32.totalorder %s20_s21, %s20_s21 }
  0x10   :  { %p636_p5 = scmp.ne.s32.totalorder %s20_s21, %s635_s27  ;;  %p641_p7 = scmp.lt.s32.totalorder %s635_s27, %s635_s27 }
  0x12   :  { %p642_p8 = por %p641_p7, %p640_p6 }
  0x14   :  { %p643_p9 = pnand %p642_p8, %p636_p5 }
  0x16   :  { %646 = shalt.err (!%p643_p9)
}
  0x17   :  { %25 = dma.hbm_to_vmem [thread:$0]  %s816_s0, 128, %s20_s21, [#allocation5], %s717_s23, %s717_s23, %s718_s24  }
  0x18   :  { %s719_s30 = smov [#allocation9]   ;;  %s720_s7 = smov [#allocation10]  }
  0x19   :  { %s45_s6 = sshll.u32 %s719_s30, 4  ;;  %s57_s8 = sshll.u32 %s720_s7, 4  ;;  %s46_s6 = int_to_ptr.vmem [resolvable:$true] %s45_s6  ;;  %s58_s8 = int_to_ptr.vmem [resolvable:$true] %s57_s8 }
  0x1a   :  { %s655_s1 = scalar_lea.vmem %s46_s6, 1024  ;;  %p660_p11 = scmp.lt.s32.totalorder %s46_s6, %s46_s6 }
  0x1b   :  { %p656_p10 = scmp.ne.s32.totalorder %s46_s6, %s655_s1  ;;  %p661_p12 = scmp.lt.s32.totalorder %s655_s1, %s655_s1 }
  0x1d   :  { %p662_p13 = por %p661_p12, %p660_p11 }
  0x1f   :  { %p663_p0 = pnand %p662_p13, %p656_p10 }
  0x21   :  { %666 = shalt.err (!%p663_p0)
}
  0x22   :  { %51 = dma.hbm_to_vmem [thread:$0]  %s819_s3, 1024, %s46_s6, [#allocation8], %s717_s23, %s717_s23, %s718_s24  }
  0x23   :  { %s675_s0 = scalar_lea.vmem %s58_s8, 1024  ;;  %p680_p2 = scmp.lt.s32.totalorder %s58_s8, %s58_s8 }
  0x24   :  { %p676_p1 = scmp.ne.s32.totalorder %s58_s8, %s675_s0  ;;  %p681_p3 = scmp.lt.s32.totalorder %s675_s0, %s675_s0 }
  0x26   :  { %p682_p4 = por %p681_p3, %p680_p2 }
  0x28   :  { %p683_p5 = pnand %p682_p4, %p676_p1 }
  0x2a   :  { %686 = shalt.err (!%p683_p5)
}
  0x2b   :  { %63 = dma.hbm_to_vmem [thread:$0]  %s820_s4, 1024, %s58_s8, [#allocation11], %s717_s23, %s717_s23, %s718_s24  }
  0x2c   :  { %707 = dma.done.wait [#allocation5], 128  }
  0x2d   :  { %708 = vsyncadd [#allocation5], 4294967168 }
  0x2e   :  { %709 = dma.done.wait [#allocation8], 2048  }
  0x2f   :  { %710 = vsyncadd [#allocation8], 4294965248 }
  0x30   :  { %711 = dma.done.wait [#allocation11], 1024  }
  0x31   :  { %712 = vsyncadd [#allocation11], 4294966272  ;;  %v721_v0 = vmov 0.0   ;;  %vm722_vm0 = vmmov 0   ;;  %v582_v1 = vld [vmem:[#allocation9 + $0x38] sm:$0xff]   ;;  %v583_v2 = vld [vmem:[#allocation9 + $0x30] sm:$0xff]  }
  0x32   :  { %531 = vmatprep.subr.bf16.mxu1 %v721_v0  ;;  %547 = vmatprep.mubr.msk.bf16.mxu1 %vm722_vm0, %v721_v0  ;;  %v584_v3 = vld [vmem:[#allocation9 + $0x28] sm:$0xff]   ;;  %v591_v4 = vld [vmem:[#allocation7 + $0x38] sm:$0xff]   ;;  %v585_v5 = vld [vmem:[#allocation9 + $0x20] sm:$0xff]   ;;  %s723_s13 = smov [#allocation12]  }
  0x33   :  { %511 = vmatprep.subr.bf16.mxu0 %v721_v0  ;;  %527 = vmatprep.mubr.msk.bf16.mxu0 %vm722_vm0, %v721_v0  ;;  %v592_v6 = vld [vmem:[#allocation7 + $0x30] sm:$0xff]   ;;  %v586_v7 = vld [vmem:[#allocation9 + $0x18] sm:$0xff]   ;;  %v593_v8 = vld [vmem:[#allocation7 + $0x28] sm:$0xff]   ;;  %s444_s14 = sshll.u32 %s723_s13, 4  ;;  %s445_s14 = int_to_ptr.vmem [resolvable:$true] %s444_s14 }
  0x34   :  { %532 = vmatpush3.bf16.msra.mxu1 %v582_v1  ;;  %512 = vmatpush3.bf16.msra.mxu0 %v591_v4  ;;  %v587_v9 = vld [vmem:[#allocation9 + $0x10] sm:$0xff]   ;;  %v594_v10 = vld [vmem:[#allocation7 + $0x20] sm:$0xff]   ;;  %v588_v11 = vld [vmem:[#allocation9 + $0x8] sm:$0xff]   ;;  %s687_s15 = scalar_lea.vmem %s445_s14, 256  ;;  %p692_p7 = scmp.lt.s32.totalorder %s445_s14, %s445_s14 }
  0x35   :  { %533 = vmatprep.subr.bf16.mxu1 %v721_v0  ;;  %513 = vmatprep.subr.bf16.mxu0 %v721_v0  ;;  %v595_v12 = vld [vmem:[#allocation7 + $0x18] sm:$0xff]   ;;  %v589_v13 = vld [vmem:[#allocation9] sm:$0xff]   ;;  %v596_v14 = vld [vmem:[#allocation7 + $0x10] sm:$0xff]   ;;  %p688_p6 = scmp.ne.s32.totalorder %s445_s14, %s687_s15  ;;  %p693_p8 = scmp.lt.s32.totalorder %s687_s15, %s687_s15 }
  0x36   :  { %v590_v15 = vld [vmem:[#allocation4] sm:$0xff]   ;;  %v597_v16 = vld [vmem:[#allocation7 + $0x8] sm:$0xff]   ;;  %v598_v17 = vld [vmem:[#allocation7] sm:$0xff]  }
  0x37   :  { %v599_v18 = vld [vmem:[#allocation10 + $0x38] sm:$0xff]   ;;  %v600_v19 = vld [vmem:[#allocation10 + $0x30] sm:$0xff]   ;;  %v601_v20 = vld [vmem:[#allocation10 + $0x28] sm:$0xff]   ;;  %p694_p9 = por %p693_p8, %p692_p7 }
  0x38   :  { %534 = vmatpush3.bf16.msra.mxu1 %v583_v2  ;;  %514 = vmatpush3.bf16.msra.mxu0 %v592_v6  ;;  %v602_v21 = vld [vmem:[#allocation10 + $0x20] sm:$0xff]   ;;  %v603_v22 = vld [vmem:[#allocation10 + $0x18] sm:$0xff]   ;;  %v604_v23 = vld [vmem:[#allocation10 + $0x10] sm:$0xff]  }
  0x39   :  { %535 = vmatprep.subr.bf16.mxu1 %v721_v0  ;;  %515 = vmatprep.subr.bf16.mxu0 %v721_v0  ;;  %v605_v24 = vld [vmem:[#allocation10 + $0x8] sm:$0xff]   ;;  %v606_v25 = vld [vmem:[#allocation10] sm:$0xff]   ;;  %v458_v35 = vld [vmem:[%s818_s2] ss:$0 sm:$0xff]  ;;  %p695_p10 = pnand %p694_p9, %p688_p6 }
  0x3c   :  { %536 = vmatpush3.bf16.msra.mxu1 %v584_v3  ;;  %516 = vmatpush3.bf16.msra.mxu0 %v593_v8 }
  0x3d   :  { %537 = vmatprep.subr.bf16.mxu1 %v721_v0  ;;  %517 = vmatprep.subr.bf16.mxu0 %v721_v0 }
  0x40   :  { %538 = vmatpush3.bf16.msra.mxu1 %v585_v5  ;;  %518 = vmatpush3.bf16.msra.mxu0 %v594_v10 }
  0x41   :  { %539 = vmatprep.subr.bf16.mxu1 %v721_v0  ;;  %519 = vmatprep.subr.bf16.mxu0 %v721_v0 }
  0x44   :  { %540 = vmatpush3.bf16.msra.mxu1 %v586_v7  ;;  %520 = vmatpush3.bf16.msra.mxu0 %v595_v12 }
  0x45   :  { %541 = vmatprep.subr.bf16.mxu1 %v721_v0  ;;  %521 = vmatprep.subr.bf16.mxu0 %v721_v0 }
  0x48   :  { %542 = vmatpush3.bf16.msra.mxu1 %v587_v9  ;;  %522 = vmatpush3.bf16.msra.mxu0 %v596_v14 }
  0x49   :  { %543 = vmatprep.subr.bf16.mxu1 %v721_v0  ;;  %523 = vmatprep.subr.bf16.mxu0 %v721_v0 }
  0x4c   :  { %544 = vmatpush3.bf16.msra.mxu1 %v588_v11  ;;  %524 = vmatpush3.bf16.msra.mxu0 %v597_v16 }
  0x4d   :  { %545 = vmatprep.subr.bf16.mxu1 %v721_v0  ;;  %525 = vmatprep.subr.bf16.mxu0 %v721_v0 }
  0x50   :  { %546 = vmatpush3.bf16.msra.mxu1 %v589_v13  ;;  %526 = vmatpush3.bf16.msra.mxu0 %v598_v17 }
  0x51   :  { %551 = vmatprep.subr.bf16.mxu0 %v721_v0 }
  0x53   :  { %548 = vmatmul.mubr.bf16.vlgmr.msra.gmra.mxu1 %v590_v15  ;;  %528 = vmatmul.mubr.bf16.vlgmr.msra.gmra.mxu0 %v590_v15 }
  0x54   :  { %552 = vmatpush3.bf16.msra.mxu0 %v599_v18  ;;  %567 = vmatprep.mubr.msk.bf16.mxu0 %vm722_vm0, %v721_v0 }
  0x55   :  { %553 = vmatprep.subr.bf16.mxu0 %v721_v0 }
  0x58   :  { %554 = vmatpush3.bf16.msra.mxu0 %v600_v19 }
  0x59   :  { %555 = vmatprep.subr.bf16.mxu0 %v721_v0 }
  0x5c   :  { %556 = vmatpush3.bf16.msra.mxu0 %v601_v20 }
  0x5d   :  { %557 = vmatprep.subr.bf16.mxu0 %v721_v0 }
  0x60   :  { %558 = vmatpush3.bf16.msra.mxu0 %v602_v21 }
  0x61   :  { %559 = vmatprep.subr.bf16.mxu0 %v721_v0 }
  0x64   :  { %560 = vmatpush3.bf16.msra.mxu0 %v603_v22 }
  0x65   :  { %561 = vmatprep.subr.bf16.mxu0 %v721_v0 }
  0x68   :  { %562 = vmatpush3.bf16.msra.mxu0 %v604_v23 }
  0x69   :  { %563 = vmatprep.subr.bf16.mxu0 %v721_v0 }
  0x6c   :  { %564 = vmatpush3.bf16.msra.mxu0 %v605_v24 }
  0x6d   :  { %565 = vmatprep.subr.bf16.mxu0 %v721_v0 }
  0x70   :  { %566 = vmatpush3.bf16.msra.mxu0 %v606_v25 }
 0x113   :  { %v311_v26 = vpop.f32.mrf.mxu1  ;;  %v200_v31 = vpop.f32.mrf.mxu0 }
 0x114   :  { %v207_v36 = vadd.f32 %v458_v35, %v200_v31 }
 0x115   :  { %v549_v27 = vpop.f32.mrf.mxu1  ;;  %v529_v32 = vpop.f32.mrf.mxu0 }
 0x117   :  { %v314_v28 = vpop.f32.mrf.mxu1  ;;  %v203_v33 = vpop.f32.mrf.mxu0 }
 0x118   :  { %v327_v29 = vpack.c.bf16 %v314_v28, %v311_v26  ;;  %v208_v40 = vadd.f32 %v458_v35, %v203_v33 }
 0x119   :  { %v550_v30 = vpop.f32.mrf.mxu1  ;;  %v530_v34 = vpop.f32.mrf.mxu0 }
 0x11a   :  { %568 = vmatmul.mubr.bf16.vlgmr.msra.gmra.mxu0 %v327_v29 }
 0x1da   :  { %v426_v37 = vpop.f32.mrf.mxu0 }
 0x1db   :  { %v435_v38 = vadd.f32 %v426_v37, %v207_v36 }
 0x1dc   :  { %v569_v39 = vpop.f32.mrf.mxu0 }
 0x1dd   :  { %437 = vst [vmem:[#allocation12] sm:$0xff] %v435_v38 }
 0x1de   :  { %v429_v41 = vpop.f32.mrf.mxu0 }
 0x1df   :  { %v436_v42 = vadd.f32 %v429_v41, %v208_v40 }
 0x1e0   :  { %v570_v43 = vpop.f32.mrf.mxu0 }
 0x1e1   :  { %438 = vst [vmem:[#allocation12 + $0x8] sm:$0xff] %v436_v42 }
 0x1e2   :  { %698 = shalt.err (!%p695_p10)
}
 0x1e3   :  { %s724_s2 = smov 128   ;;  %s725_s16 = smov 8  }
 0x1e4   :  { %450 = dma.vmem_to_hbm [thread:$0]  %s445_s14, 256, %s821_s5, [#allocation6], %s724_s2, %s724_s2, %s725_s16  }
 0x1e5   :  { %713 = dma.done.wait [#allocation6], 256  }
 0x1e6   :  { %714 = vsyncadd [#allocation6], 4294967040 }
 0x1e7   :  { %454 = vsyncpa [#allocation5], 1 }
 0x1e8   :  { %455 = vsyncpa [#allocation8], 1 }
 0x1e9   :  { %456 = vsyncpa [#allocation11], 1 }
 0x1ea   :  { %457 = vsyncpa [#allocation6], 1 }

</bundles_post_ra>
